<compile_context>
chip_gen: v5e
topology: v5e:2x2
jax: 0.10.0
libtpu: 0.0.40
codegen_flags: <defaults>
</compile_context>

<pallas_src>
import jax
import jax.numpy as jnp
from jax import lax
from jax.experimental import pallas as pl
from jax.experimental.pallas import tpu as pltpu


def bottleneck_kernel(x_ref, s1_ref, b1_ref, w1_ref, s2_ref, b2_ref, w2_ref,
                      s3_ref, b3_ref, w3_ref, out_ref):
    # x_ref:   (1, H, W*Cin)      one image, row-flattened NHWC
    # w1_ref:  (W*Cin, W*P)       block-diagonal 1x1 conv, bf16
    # w2_ref:  (3, W*P, W*P)      banded 3x3 conv (one band per kh tap), bf16
    # w3_ref:  (W*P, W*4P)        block-diagonal 1x1 conv, bf16
    # s*/b*:   (1, W*C)           per-channel BN scale/shift tiled over W, f32
    # out_ref: (1, H, W*4P)
    H = x_ref.shape[1]
    WP = s2_ref.shape[1]

    x = x_ref[0].astype(jnp.float32)                         # (H, W*Cin)

    # --- bn1 + relu (f32 VPU), conv1: one lane-dense bf16 matmul ---
    h = jnp.maximum(x * s1_ref[0, :] + b1_ref[0, :], 0.0)
    h = jnp.dot(h.astype(jnp.bfloat16), w1_ref[...],
                preferred_element_type=jnp.float32)          # (H, W*P)

    # --- bn2 + relu ---
    h = jnp.maximum(h * s2_ref[0, :] + b2_ref[0, :], 0.0)

    # --- conv2: 3x3, stride=1, pad=1 ---
    # Pad one zero row above/below in registers; each kh tap is one matmul
    # against a banded weight (kw taps + width padding folded into the band).
    zrow = jnp.zeros((1, WP), jnp.float32)
    padded = jnp.concatenate([zrow, h, zrow], axis=0).astype(jnp.bfloat16)
    acc = jnp.dot(padded[0:H, :], w2_ref[0],
                  preferred_element_type=jnp.float32)
    acc = acc + jnp.dot(padded[1:H + 1, :], w2_ref[1],
                        preferred_element_type=jnp.float32)
    acc = acc + jnp.dot(padded[2:H + 2, :], w2_ref[2],
                        preferred_element_type=jnp.float32)  # (H, W*P)

    # --- bn3 + relu, conv3: one lane-dense bf16 matmul, residual add ---
    h = jnp.maximum(acc * s3_ref[0, :] + b3_ref[0, :], 0.0)
    h = jnp.dot(h.astype(jnp.bfloat16), w3_ref[...],
                preferred_element_type=jnp.float32)          # (H, W*4P)
    out_ref[0] = (h + x).astype(out_ref.dtype)


def preact_bottleneck(x_nchw, params):
    """x_nchw: (N, Cin, H, W) float32, Cin == 4 * planes (stride=1, no downsample)."""
    N, C, H, W = x_nchw.shape
    P = params["w1"].shape[1]
    assert C == 4 * P, "residual add requires inplanes == planes * expansion"

    WC, WP, WO = W * C, W * P, W * 4 * P

    # NCHW -> NHWC -> (N, H, W*C).  (The (W, C) merge is a free reshape.)
    x2d = jnp.transpose(x_nchw, (0, 2, 3, 1)).reshape(N, H, WC)

    eye_w = jnp.eye(W, dtype=jnp.float32)

    # 1x1 convs as block-diagonal matmuls over the flattened (W, C) axis.
    w1_blk = jnp.kron(eye_w, params["w1"]).astype(jnp.bfloat16)      # (W*C,  W*P)
    w3_blk = jnp.kron(eye_w, params["w3"]).astype(jnp.bfloat16)      # (W*P,  W*4P)

    # 3x3 conv: one banded (W*P, W*P) matrix per kh tap.
    w2_hwio = params["w2"]                                           # (3, 3, P, P)
    bands = []
    for dy in range(3):
        a = jnp.zeros((WP, WP), jnp.float32)
        for dx in range(3):
            a = a + jnp.kron(jnp.eye(W, k=1 - dx, dtype=jnp.float32),
                             w2_hwio[dy, dx])
        bands.append(a)
    w2_band = jnp.stack(bands).astype(jnp.bfloat16)                  # (3, W*P, W*P)

    def tile_w(v):
        return jnp.tile(v.astype(jnp.float32), W).reshape(1, -1)

    s1t, b1t = tile_w(params["s1"]), tile_w(params["b1"])
    s2t, b2t = tile_w(params["s2"]), tile_w(params["b2"])
    s3t, b3t = tile_w(params["s3"]), tile_w(params["b3"])

    flops = 2 * N * H * W * (C * P + 9 * P * P + P * 4 * P)
    bytes_accessed = (
        x2d.size * 4 + N * H * WO * 4
        + 2 * (w1_blk.size + w2_band.size + w3_blk.size)
        + 4 * (s1t.size + b1t.size + s2t.size + b2t.size + s3t.size + b3t.size))

    def full(shape):
        return pl.BlockSpec(shape, lambda n, _r=len(shape): (0,) * _r)

    out2d = pl.pallas_call(
        bottleneck_kernel,
        out_shape=jax.ShapeDtypeStruct((N, H, WO), x_nchw.dtype),
        grid=(N,),
        in_specs=[
            pl.BlockSpec((1, H, WC), lambda n: (n, 0, 0)),
            full((1, WC)), full((1, WC)), full((WC, WP)),
            full((1, WP)), full((1, WP)), full((3, WP, WP)),
            full((1, WP)), full((1, WP)), full((WP, WO)),
        ],
        out_specs=pl.BlockSpec((1, H, WO), lambda n: (n, 0, 0)),
        compiler_params=pltpu.CompilerParams(
            dimension_semantics=("parallel",),
            vmem_limit_bytes=32 * 1024 * 1024),
        cost_estimate=pl.CostEstimate(flops=flops, transcendentals=0,
                                      bytes_accessed=bytes_accessed),
    )(x2d, s1t, b1t, w1_blk, s2t, b2t, w2_band, s3t, b3t, w3_blk)

    out_nhwc = out2d.reshape(N, H, W, 4 * P)
    return jnp.transpose(out_nhwc, (0, 3, 1, 2))                     # NHWC -> NCHW


def make_params(key, inplanes, planes):
    """Deterministic synthetic params matching nn.Module __init__ shapes."""
    eps = 1e-5
    ks = jax.random.split(key, 16)

    def bn_params(k0, k1, k2, k3, c):
        gamma = jax.random.uniform(k0, (c,), jnp.float32, 0.5, 1.5)
        beta = 0.1 * jax.random.normal(k1, (c,), jnp.float32)
        mean = 0.1 * jax.random.normal(k2, (c,), jnp.float32)
        var = jax.random.uniform(k3, (c,), jnp.float32, 0.5, 1.5)
        scale = gamma * lax.rsqrt(var + eps)
        shift = beta - mean * scale
        return scale, shift

    s1, b1 = bn_params(ks[0], ks[1], ks[2], ks[3], inplanes)
    s2, b2 = bn_params(ks[4], ks[5], ks[6], ks[7], planes)
    s3, b3 = bn_params(ks[8], ks[9], ks[10], ks[11], planes)

    # PyTorch conv weights: (out, in, kh, kw)
    w1_oihw = 0.1 * jax.random.normal(ks[12], (planes, inplanes, 1, 1), jnp.float32)
    w2_oihw = 0.1 * jax.random.normal(ks[13], (planes, planes, 3, 3), jnp.float32)
    w3_oihw = 0.1 * jax.random.normal(ks[14], (planes * 4, planes, 1, 1), jnp.float32)

    return {
        "s1": s1, "b1": b1, "s2": s2, "b2": b2, "s3": s3, "b3": b3,
        # matmul-layout weights for the kernel
        "w1": jnp.transpose(w1_oihw[:, :, 0, 0], (1, 0)),        # (Cin, P)
        "w2": jnp.transpose(w2_oihw, (2, 3, 1, 0)),              # (kh, kw, Pin, Pout)
        "w3": jnp.transpose(w3_oihw[:, :, 0, 0], (1, 0)),        # (P, 4P)
        # original OIHW weights kept only for the pure-JAX reference
        "w1_oihw": w1_oihw, "w2_oihw": w2_oihw, "w3_oihw": w3_oihw,
    }


def ref_forward(x, p):
    """Pure-JAX f32 reference (NCHW, mirrors the PyTorch forward in eval mode)."""
    dn = ("NCHW", "OIHW", "NCHW")

    def bn(h, s, b):
        return h * s[None, :, None, None] + b[None, :, None, None]

    h = jax.nn.relu(bn(x, p["s1"], p["b1"]))
    h = lax.conv_general_dilated(h, p["w1_oihw"], (1, 1), "VALID",
                                 dimension_numbers=dn)
    h = jax.nn.relu(bn(h, p["s2"], p["b2"]))
    h = lax.conv_general_dilated(h, p["w2_oihw"], (1, 1), ((1, 1), (1, 1)),
                                 dimension_numbers=dn)
    h = jax.nn.relu(bn(h, p["s3"], p["b3"]))
    h = lax.conv_general_dilated(h, p["w3_oihw"], (1, 1), "VALID",
                                 dimension_numbers=dn)
    return h + x


if __name__ == "__main__":
    N, planes, H, W = 2, 4, 16, 16
    inplanes = planes * 4                      # 16, so residual add is valid

    key = jax.random.PRNGKey(0)
    kx, kp = jax.random.split(key)
    x = jax.random.normal(kx, (N, inplanes, H, W), jnp.float32)   # NCHW like PyTorch
    params = make_params(kp, inplanes, planes)

    out = preact_bottleneck(x, params)
    out = jax.block_until_ready(out)

    ref = jax.block_until_ready(ref_forward(x, params))
    assert out.shape == (N, inplanes, H, W)
    # Kernel uses bf16 MXU inputs with f32 accumulation; reference is pure f32.
    assert jnp.allclose(out, ref, atol=3e-2, rtol=3e-2), (
        float(jnp.max(jnp.abs(out - ref))))

    print("KERNEL_OK")
</pallas_src>

<mosaic_0001>
module attributes {stable_mosaic.version = 11 : i64} {
  func.func @bottleneck_kernel(%arg0: i32, %arg1: memref<1x16x256xf32, #tpu.memory_space<vmem>>, %arg2: memref<1x256xf32, #tpu.memory_space<vmem>>, %arg3: memref<1x256xf32, #tpu.memory_space<vmem>>, %arg4: memref<256x64xbf16, #tpu.memory_space<vmem>>, %arg5: memref<1x64xf32, #tpu.memory_space<vmem>>, %arg6: memref<1x64xf32, #tpu.memory_space<vmem>>, %arg7: memref<3x64x64xbf16, #tpu.memory_space<vmem>>, %arg8: memref<1x64xf32, #tpu.memory_space<vmem>>, %arg9: memref<1x64xf32, #tpu.memory_space<vmem>>, %arg10: memref<64x256xbf16, #tpu.memory_space<vmem>>, %arg11: memref<1x16x256xf32, #tpu.memory_space<vmem>>) attributes {dimension_semantics = [#tpu.dimension_semantics<parallel>], iteration_bounds = array<i64: 2>, scalar_prefetch = 0 : i64, scratch_operands = 0 : i64, tpu.core_type = #tpu.core_type<tc>, window_params = [{transform_indices = @transform_0, window_bounds = array<i64: 1, 16, 256>}, {pipeline_mode = #tpu.pipeline_mode<synchronous>, transform_indices = @transform_1, window_bounds = array<i64: 1, 256>}, {pipeline_mode = #tpu.pipeline_mode<synchronous>, transform_indices = @transform_2, window_bounds = array<i64: 1, 256>}, {pipeline_mode = #tpu.pipeline_mode<synchronous>, transform_indices = @transform_3, window_bounds = array<i64: 256, 64>}, {pipeline_mode = #tpu.pipeline_mode<synchronous>, transform_indices = @transform_4, window_bounds = array<i64: 1, 64>}, {pipeline_mode = #tpu.pipeline_mode<synchronous>, transform_indices = @transform_5, window_bounds = array<i64: 1, 64>}, {pipeline_mode = #tpu.pipeline_mode<synchronous>, transform_indices = @transform_6, window_bounds = array<i64: 3, 64, 64>}, {pipeline_mode = #tpu.pipeline_mode<synchronous>, transform_indices = @transform_7, window_bounds = array<i64: 1, 64>}, {pipeline_mode = #tpu.pipeline_mode<synchronous>, transform_indices = @transform_8, window_bounds = array<i64: 1, 64>}, {pipeline_mode = #tpu.pipeline_mode<synchronous>, transform_indices = @transform_9, window_bounds = array<i64: 64, 256>}, {transform_indices = @transform_10, window_bounds = array<i64: 1, 16, 256>}]} {
    %c0 = arith.constant 0 : index
    %c0_0 = arith.constant 0 : index
    %c0_1 = arith.constant 0 : index
    %0 = vector.load %arg1[%c0, %c0_0, %c0_1] : memref<1x16x256xf32, #tpu.memory_space<vmem>>, vector<1x16x256xf32>
    %1 = vector.shape_cast %0 : vector<1x16x256xf32> to vector<16x256xf32>
    %c0_2 = arith.constant 0 : index
    %c0_3 = arith.constant 0 : index
    %2 = vector.load %arg2[%c0_2, %c0_3] : memref<1x256xf32, #tpu.memory_space<vmem>>, vector<1x256xf32>
    %3 = vector.shape_cast %2 : vector<1x256xf32> to vector<256xf32>
    %4 = vector.shape_cast %3 : vector<256xf32> to vector<1x256xf32>
    %5 = vector.broadcast %4 : vector<1x256xf32> to vector<16x256xf32>
    %6 = arith.mulf %1, %5 : vector<16x256xf32>
    %c0_4 = arith.constant 0 : index
    %c0_5 = arith.constant 0 : index
    %7 = vector.load %arg3[%c0_4, %c0_5] : memref<1x256xf32, #tpu.memory_space<vmem>>, vector<1x256xf32>
    %8 = vector.shape_cast %7 : vector<1x256xf32> to vector<256xf32>
    %9 = vector.shape_cast %8 : vector<256xf32> to vector<1x256xf32>
    %10 = vector.broadcast %9 : vector<1x256xf32> to vector<16x256xf32>
    %11 = arith.addf %6, %10 : vector<16x256xf32>
    %cst = arith.constant 0.000000e+00 : f32
    %12 = vector.broadcast %cst : f32 to vector<16x256xf32>
    %13 = arith.maximumf %11, %12 : vector<16x256xf32>
    %14 = arith.truncf %13 : vector<16x256xf32> to vector<16x256xbf16>
    %c0_6 = arith.constant 0 : index
    %c0_7 = arith.constant 0 : index
    %15 = vector.load %arg4[%c0_6, %c0_7] : memref<256x64xbf16, #tpu.memory_space<vmem>>, vector<256x64xbf16>
    %cst_8 = arith.constant dense<0.000000e+00> : vector<16x64xf32>
    %16 = tpu.matmul %14, %15, %cst_8 {dimension_numbers = #tpu.dot_dimension_numbers<[1], [0], [0], [1], [0, 0, 1, 1], [], []>} : vector<16x256xbf16>, vector<256x64xbf16>, vector<16x64xf32> -> vector<16x64xf32>
    %c0_9 = arith.constant 0 : index
    %c0_10 = arith.constant 0 : index
    %17 = vector.load %arg5[%c0_9, %c0_10] : memref<1x64xf32, #tpu.memory_space<vmem>>, vector<1x64xf32>
    %18 = vector.shape_cast %17 : vector<1x64xf32> to vector<64xf32>
    %19 = vector.shape_cast %18 : vector<64xf32> to vector<1x64xf32>
    %20 = vector.broadcast %19 : vector<1x64xf32> to vector<16x64xf32>
    %21 = arith.mulf %16, %20 : vector<16x64xf32>
    %c0_11 = arith.constant 0 : index
    %c0_12 = arith.constant 0 : index
    %22 = vector.load %arg6[%c0_11, %c0_12] : memref<1x64xf32, #tpu.memory_space<vmem>>, vector<1x64xf32>
    %23 = vector.shape_cast %22 : vector<1x64xf32> to vector<64xf32>
    %24 = vector.shape_cast %23 : vector<64xf32> to vector<1x64xf32>
    %25 = vector.broadcast %24 : vector<1x64xf32> to vector<16x64xf32>
    %26 = arith.addf %21, %25 : vector<16x64xf32>
    %cst_13 = arith.constant 0.000000e+00 : f32
    %27 = vector.broadcast %cst_13 : f32 to vector<16x64xf32>
    %28 = arith.maximumf %26, %27 : vector<16x64xf32>
    %cst_14 = arith.constant 0.000000e+00 : f32
    %29 = vector.broadcast %cst_14 : f32 to vector<1x64xf32>
    %30 = tpu.concatenate %29, %28, %29 in 0 : vector<1x64xf32>, vector<16x64xf32>, vector<1x64xf32> -> vector<18x64xf32>
    %31 = arith.truncf %30 : vector<18x64xf32> to vector<18x64xbf16>
    %32 = vector.extract_strided_slice %31 {offsets = [0, 0], sizes = [16, 64], strides = [1, 1]} : vector<18x64xbf16> to vector<16x64xbf16>
    %c0_15 = arith.constant 0 : index
    %c0_16 = arith.constant 0 : index
    %c0_17 = arith.constant 0 : index
    %33 = vector.load %arg7[%c0_15, %c0_16, %c0_17] : memref<3x64x64xbf16, #tpu.memory_space<vmem>>, vector<1x64x64xbf16>
    %34 = vector.shape_cast %33 : vector<1x64x64xbf16> to vector<64x64xbf16>
    %cst_18 = arith.constant dense<0.000000e+00> : vector<16x64xf32>
    %35 = tpu.matmul %32, %34, %cst_18 {dimension_numbers = #tpu.dot_dimension_numbers<[1], [0], [0], [1], [0, 0, 1, 1], [], []>} : vector<16x64xbf16>, vector<64x64xbf16>, vector<16x64xf32> -> vector<16x64xf32>
    %36 = vector.extract_strided_slice %31 {offsets = [1, 0], sizes = [16, 64], strides = [1, 1]} : vector<18x64xbf16> to vector<16x64xbf16>
    %c1 = arith.constant 1 : index
    %c0_19 = arith.constant 0 : index
    %c0_20 = arith.constant 0 : index
    %37 = vector.load %arg7[%c1, %c0_19, %c0_20] : memref<3x64x64xbf16, #tpu.memory_space<vmem>>, vector<1x64x64xbf16>
    %38 = vector.shape_cast %37 : vector<1x64x64xbf16> to vector<64x64xbf16>
    %cst_21 = arith.constant dense<0.000000e+00> : vector<16x64xf32>
    %39 = tpu.matmul %36, %38, %cst_21 {dimension_numbers = #tpu.dot_dimension_numbers<[1], [0], [0], [1], [0, 0, 1, 1], [], []>} : vector<16x64xbf16>, vector<64x64xbf16>, vector<16x64xf32> -> vector<16x64xf32>
    %40 = arith.addf %35, %39 : vector<16x64xf32>
    %41 = vector.extract_strided_slice %31 {offsets = [2, 0], sizes = [16, 64], strides = [1, 1]} : vector<18x64xbf16> to vector<16x64xbf16>
    %c2 = arith.constant 2 : index
    %c0_22 = arith.constant 0 : index
    %c0_23 = arith.constant 0 : index
    %42 = vector.load %arg7[%c2, %c0_22, %c0_23] : memref<3x64x64xbf16, #tpu.memory_space<vmem>>, vector<1x64x64xbf16>
    %43 = vector.shape_cast %42 : vector<1x64x64xbf16> to vector<64x64xbf16>
    %cst_24 = arith.constant dense<0.000000e+00> : vector<16x64xf32>
    %44 = tpu.matmul %41, %43, %cst_24 {dimension_numbers = #tpu.dot_dimension_numbers<[1], [0], [0], [1], [0, 0, 1, 1], [], []>} : vector<16x64xbf16>, vector<64x64xbf16>, vector<16x64xf32> -> vector<16x64xf32>
    %45 = arith.addf %40, %44 : vector<16x64xf32>
    %c0_25 = arith.constant 0 : index
    %c0_26 = arith.constant 0 : index
    %46 = vector.load %arg8[%c0_25, %c0_26] : memref<1x64xf32, #tpu.memory_space<vmem>>, vector<1x64xf32>
    %47 = vector.shape_cast %46 : vector<1x64xf32> to vector<64xf32>
    %48 = vector.shape_cast %47 : vector<64xf32> to vector<1x64xf32>
    %49 = vector.broadcast %48 : vector<1x64xf32> to vector<16x64xf32>
    %50 = arith.mulf %45, %49 : vector<16x64xf32>
    %c0_27 = arith.constant 0 : index
    %c0_28 = arith.constant 0 : index
    %51 = vector.load %arg9[%c0_27, %c0_28] : memref<1x64xf32, #tpu.memory_space<vmem>>, vector<1x64xf32>
    %52 = vector.shape_cast %51 : vector<1x64xf32> to vector<64xf32>
    %53 = vector.shape_cast %52 : vector<64xf32> to vector<1x64xf32>
    %54 = vector.broadcast %53 : vector<1x64xf32> to vector<16x64xf32>
    %55 = arith.addf %50, %54 : vector<16x64xf32>
    %cst_29 = arith.constant 0.000000e+00 : f32
    %56 = vector.broadcast %cst_29 : f32 to vector<16x64xf32>
    %57 = arith.maximumf %55, %56 : vector<16x64xf32>
    %58 = arith.truncf %57 : vector<16x64xf32> to vector<16x64xbf16>
    %c0_30 = arith.constant 0 : index
    %c0_31 = arith.constant 0 : index
    %59 = vector.load %arg10[%c0_30, %c0_31] : memref<64x256xbf16, #tpu.memory_space<vmem>>, vector<64x256xbf16>
    %cst_32 = arith.constant dense<0.000000e+00> : vector<16x256xf32>
    %60 = tpu.matmul %58, %59, %cst_32 {dimension_numbers = #tpu.dot_dimension_numbers<[1], [0], [0], [1], [0, 0, 1, 1], [], []>} : vector<16x64xbf16>, vector<64x256xbf16>, vector<16x256xf32> -> vector<16x256xf32>
    %61 = arith.addf %60, %1 : vector<16x256xf32>
    %c0_33 = arith.constant 0 : index
    %c0_34 = arith.constant 0 : index
    %c0_35 = arith.constant 0 : index
    %62 = vector.load %arg11[%c0_33, %c0_34, %c0_35] : memref<1x16x256xf32, #tpu.memory_space<vmem>>, vector<1x16x256xf32>
    %63 = vector.shape_cast %62 : vector<1x16x256xf32> to vector<16x256xf32>
    %64 = vector.shape_cast %61 : vector<16x256xf32> to vector<1x16x256xf32>
    tpu.vector_store %arg11[%c0_33, %c0_34, %c0_35], %64 {strides = array<i32>} : memref<1x16x256xf32, #tpu.memory_space<vmem>>, vector<1x16x256xf32>,
    return
  }
  func.func @transform_0(%arg0: i32) -> (i32, i32, i32) {
    %c0_i32 = arith.constant 0 : i32
    %c0_i32_0 = arith.constant 0 : i32
    %c0_i32_1 = arith.constant 0 : i32
    return %arg0, %c0_i32, %c0_i32_0 : i32, i32, i32
  }
  func.func @transform_1(%arg0: i32) -> (i32, i32) {
    %c0_i32 = arith.constant 0 : i32
    %c0_i32_0 = arith.constant 0 : i32
    %c0_i32_1 = arith.constant 0 : i32
    return %c0_i32, %c0_i32_0 : i32, i32
  }
  func.func @transform_2(%arg0: i32) -> (i32, i32) {
    %c0_i32 = arith.constant 0 : i32
    %c0_i32_0 = arith.constant 0 : i32
    %c0_i32_1 = arith.constant 0 : i32
    return %c0_i32, %c0_i32_0 : i32, i32
  }
  func.func @transform_3(%arg0: i32) -> (i32, i32) {
    %c0_i32 = arith.constant 0 : i32
    %c0_i32_0 = arith.constant 0 : i32
    %c0_i32_1 = arith.constant 0 : i32
    return %c0_i32, %c0_i32_0 : i32, i32
  }
  func.func @transform_4(%arg0: i32) -> (i32, i32) {
    %c0_i32 = arith.constant 0 : i32
    %c0_i32_0 = arith.constant 0 : i32
    %c0_i32_1 = arith.constant 0 : i32
    return %c0_i32, %c0_i32_0 : i32, i32
  }
  func.func @transform_5(%arg0: i32) -> (i32, i32) {
    %c0_i32 = arith.constant 0 : i32
    %c0_i32_0 = arith.constant 0 : i32
    %c0_i32_1 = arith.constant 0 : i32
    return %c0_i32, %c0_i32_0 : i32, i32
  }
  func.func @transform_6(%arg0: i32) -> (i32, i32, i32) {
    %c0_i32 = arith.constant 0 : i32
    %c0_i32_0 = arith.constant 0 : i32
    %c0_i32_1 = arith.constant 0 : i32
    %c0_i32_2 = arith.constant 0 : i32
    return %c0_i32, %c0_i32_0, %c0_i32_1 : i32, i32, i32
  }
  func.func @transform_7(%arg0: i32) -> (i32, i32) {
    %c0_i32 = arith.constant 0 : i32
    %c0_i32_0 = arith.constant 0 : i32
    %c0_i32_1 = arith.constant 0 : i32
    return %c0_i32, %c0_i32_0 : i32, i32
  }
  func.func @transform_8(%arg0: i32) -> (i32, i32) {
    %c0_i32 = arith.constant 0 : i32
    %c0_i32_0 = arith.constant 0 : i32
    %c0_i32_1 = arith.constant 0 : i32
    return %c0_i32, %c0_i32_0 : i32, i32
  }
  func.func @transform_9(%arg0: i32) -> (i32, i32) {
    %c0_i32 = arith.constant 0 : i32
    %c0_i32_0 = arith.constant 0 : i32
    %c0_i32_1 = arith.constant 0 : i32
    return %c0_i32, %c0_i32_0 : i32, i32
  }
  func.func @transform_10(%arg0: i32) -> (i32, i32, i32) {
    %c0_i32 = arith.constant 0 : i32
    %c0_i32_0 = arith.constant 0 : i32
    %c0_i32_1 = arith.constant 0 : i32
    return %arg0, %c0_i32, %c0_i32_0 : i32, i32, i32
  }
}

</mosaic_0001>

<bundles_post_ra>
// kernel: tpu_custom_call.1
= control target key start
LH: loop header
LB: loop body
LE: loop exit
PB: predicated region body
PF: predicated region fallthrough
CT: control target
= control target key end

     0   :  { %s1605_s0 = inlined_call_operand.vmem [shape: f32[2,16,256], index: 0, kind: input, shape index: {}]   ;;  %s1606_s1 = inlined_call_operand.vmem [shape: f32[1,256], index: 1, kind: input, shape index: {}]   ;;  %s1607_s2 = inlined_call_operand.vmem [shape: f32[1,256], index: 2, kind: input, shape index: {}]   ;;  %s1608_s3 = inlined_call_operand.vmem [shape: bf16[256,64], index: 3, kind: input, shape index: {}]   ;;  %s1609_s4 = inlined_call_operand.vmem [shape: f32[1,64], index: 4, kind: input, shape index: {}]   ;;  %s1610_s5 = inlined_call_operand.vmem [shape: f32[1,64], index: 5, kind: input, shape index: {}]   ;;  %s1611_s6 = inlined_call_operand.vmem [shape: bf16[3,64,64], index: 6, kind: input, shape index: {}]   ;;  %s1612_s7 = inlined_call_operand.vmem [shape: f32[1,64], index: 7, kind: input, shape index: {}]   ;;  %s1613_s8 = inlined_call_operand.vmem [shape: f32[1,64], index: 8, kind: input, shape index: {}]   ;;  %s1614_s9 = inlined_call_operand.hbm [shape: bf16[64,256], index: 9, kind: input, shape index: {}]   ;;  %s1615_s10 = inlined_call_operand.hbm [shape: f32[2,16,256], index: 10, kind: output, shape index: {}]  }
   0x1   :  { %1617 = sst [smem:[#allocation10_spill]] %s1614_s9 }
   0x2   :  { %15 = vsyncpa [#allocation3], 0 }
   0x3   :  { %16 = vsyncpa [#allocation4], 0 }
   0x4   :  { %18 = vsyncpa [#allocation4 + $0x1], 0  ;;  %s1387_s13 = smov 0   ;;  %s1389_s14 = smov 0  }
   0x5   :  { %s1391_s15 = smov 0   ;;  %s1393_s16 = smov 0  }
   0x6 LB: > { %1618 = sst [smem:[#allocation8_spill]] %s1321_s15  ;;  %s1408_s17 = sadd.s32 4294967295, %s1325_s16   ;;  %s1325_s16 = sphi %s1393_s16, %s1627_s16   ;;  %s1321_s15 = sphi %s1391_s15, %s1624_s15   ;;  %s1317_s14 = sphi %s1389_s14, %s1626_s14   ;;  %s1313_s13 = sphi %s1387_s13, %s1625_s13  }
   0x7   : > { %s954_s18 = sadd.s32 4294967294, %s1325_s16   ;;  %s1412_s19 = sadd.s32 1, %s1325_s16  }
   0x8   : > { %s246_s20 = sadd.s32 1, %s1321_s15  ;;  %s243_s21 = ssub.s32 %s1325_s16, %s1412_s19 }
   0x9   : > { %p256_p0 = scmp.ne.s32.totalorder %s1321_s15, %s1317_s14  ;;  %p244_p1 = scmp.eq.s32.totalorder %s243_s21, 0 }
   0xa   : > { %p257_p2 = scmp.eq.s32.totalorder %s1408_s17, 1  ;;  %p262_p3 = scmp.ne.s32.totalorder %s1317_s14, %s1313_s13 }
   0xb   : > { %p263_p4 = scmp.eq.s32.totalorder %s954_s18, 1  ;;  %p955_p7 = scmp.ge.s32.totalorder %s1325_s16, 1 }
   0xc   : > { %s1423_s22 = scalar_select %p244_p1, %s1321_s15, %s246_s20  }
   0xd   : > { %p1425_p5 = por %p257_p2, %p256_p0  ;;  %p1429_p6 = por %p263_p4, %p262_p3 }
   0xe   : > { %1619 = sst [smem:[#allocation9_spill]] %s1423_s22  ;;  %p270_p8 = scmp.lt.s32.totalorder %s1325_s16, 3 }
   0xf   : > { %p1185_p9 = scmp.eq.s32.totalorder %s1408_s17, 0  ;;  %s1622_s9 = sld [smem:[#allocation10_spill]] }
  0x10   : > { %p271_p10 = pnand %p955_p7, %p270_p8  ;;  %s1327_s28 = smov [#allocation2]  }
  0x11   : > { %s307_s29 = sshll.u32 %s1327_s28, 4  ;;  %s1328_s30 = smov 128   ;;  %s308_s29 = int_to_ptr.vmem [resolvable:$true] %s307_s29 }
  0x12   : > { %p1177_p11 = pneg %p271_p10  ;;  %s1329_s11 = smov 8  }
  0x13   : > { %331 = sbr.rel (%p271_p10) target bundleno = 528 (0x210), region = 60 }
  0x14   : > { %p1178_p12 = pnand %p1185_p9, %p1177_p11 }
  0x15   : > { %s305_s27 = sshll.u32 %s1622_s9, 4  ;;  %s306_s27 = int_to_ptr.hbm [resolvable:$true] %s305_s27 }
  0x16   : > { %1180 = dma.hbm_to_vmem [thread:$0]  (!%p1178_p12), %s306_s27, 1024, %s308_s29, [#allocation3], %s1328_s30, %s1328_s30, %s1329_s11  }
  0x18   : > { %1304 = dma.done.wait (%p1185_p9), [#allocation3], 1024  }
  0x19   : > { %1306 = vsyncadd (%p1185_p9), [#allocation3], 4294966272  ;;  %p370_p13 = scmp.lt.s32.totalorder %s1408_s17, 1  ;;  %v1141_v0 = vld [vmem:[%s1608_s3 + $0x38] sm:$0xff]  ;;  %v1140_v2 = vld [vmem:[%s1608_s3 + $0x30] sm:$0xff]  ;;  %vm578_vm0 = vcmask 1040384  }
  0x1a   : > { %v1149_v1 = vld [vmem:[%s1608_s3 + $0x78] sm:$0xff]  ;;  %534 = vmatpush.bf16.msra.mxu0 %v1141_v0  ;;  %v1148_v3 = vld [vmem:[%s1608_s3 + $0x70] sm:$0xff]  ;;  %v1139_v4 = vld [vmem:[%s1608_s3 + $0x28] sm:$0xff]  ;;  %vm652_vm1 = vcmask 523264   ;;  %vm615_vm2 = vsmask.f32 7424 }
  0x1b   : > { %548 = vmatpush.bf16.msra.mxu1 %v1149_v1  ;;  %s371_s29 = scalar_select %p370_p13, %s1408_s17, 1  ;;  %v1147_v5 = vld [vmem:[%s1608_s3 + $0x68] sm:$0xff]  ;;  %v1138_v6 = vld [vmem:[%s1608_s3 + $0x20] sm:$0xff]  ;;  %v1137_v9 = vld [vmem:[%s1608_s3 + $0x18] sm:$0xff]  ;;  %vm719_vm3 = vcmask 1046528  }
  0x1c   : > { %v1146_v7 = vld [vmem:[%s1608_s3 + $0x60] sm:$0xff]  ;;  %v1145_v10 = vld [vmem:[%s1608_s3 + $0x58] sm:$0xff]  ;;  %v1136_v24 = vld [vmem:[%s1608_s3 + $0x10] sm:$0xff]  ;;  %s367_s22 = sand.u32 1, %s1317_s14   ;;  %s1170_s27 = sshll.u32 %s1408_s17, 5 }
  0x1d   : > { %s1133_s20 = sshll.u32 %s371_s29, 5  ;;  %v380_v8 = vld [vmem:[%s1606_s1] sm:$0x3]  ;;  %v1144_v25 = vld [vmem:[%s1608_s3 + $0x50] sm:$0xff]  ;;  %v1135_v30 = vld [vmem:[%s1608_s3 + $0x8] sm:$0xff]  ;;  %s876_s11 = scalar_lea.hbm %s1615_s10, %s1170_s27 }
  0x1e   : > { %535 = vmatpush.bf16.msra.mxu0 %v1140_v2  ;;  %s374_s30 = scalar_lea.vmem %s1605_s0, %s1133_s20  ;;  %v382_v12 = vperm.slane %v380_v8, 0  ;;  %v390_v13 = vld [vmem:[%s1607_s2] sm:$0x3]  ;;  %v383_v14 = vperm.slane %v380_v8, 1  ;;  %v1143_v31 = vld [vmem:[%s1608_s3 + $0x48] sm:$0xff]  ;;  %v1153_v40 = vld [vmem:[%s1611_s6 + $0x18] sm:$0xff] }
  0x1f   : > { %549 = vmatpush.bf16.msra.mxu1 %v1148_v3  ;;  %v1483_v11 = vld [vmem:[%s374_s30] sm:$0xff]  ;;  %v1488_v15 = vld [vmem:[%s374_s30 + $0x10] sm:$0xff]  ;;  %v1490_v16 = vld [vmem:[%s374_s30 + $0x8] sm:$0xff]  ;;  %v392_v18 = vperm.slane %v390_v13, 0  ;;  %v393_v19 = vperm.slane %v390_v13, 1  ;;  %700 = vmatpush.bf16.msra.mxu3 %v1153_v40  ;;  %s960_s20 = sshll.u32 %s367_s22, 5 }
  0x20   : > { %v1492_v17 = vld [vmem:[%s374_s30 + $0x18] sm:$0xff]  ;;  %v386_v20 = vmul.f32 %v382_v12, %v1483_v11  ;;  %v388_v21 = vmul.f32 %v382_v12, %v1488_v15  ;;  %v387_v22 = vmul.f32 %v383_v14, %v1490_v16  ;;  %v1134_v36 = vld [vmem:[%s1608_s3] sm:$0xff]  ;;  %v1152_v41 = vld [vmem:[%s1611_s6 + $0x10] sm:$0xff]  ;;  %s369_s26 = scalar_lea.vmem [#allocation5], %s960_s20  ;;  %s879_s29 = sshll.u32 %s876_s11, 4  ;;  %s880_s29 = int_to_ptr.hbm [resolvable:$true] %s879_s29 }
  0x21   : > { %v389_v23 = vmul.f32 %v383_v14, %v1492_v17  ;;  %v1142_v37 = vld [vmem:[%s1608_s3 + $0x40] sm:$0xff]  ;;  %v1157_v42 = vld [vmem:[%s1611_s6 + $0x38] sm:$0xff]  ;;  %v1151_v43 = vld [vmem:[%s1611_s6 + $0x8] sm:$0xff]  ;;  %s877_s12 = sshll.u32 %s369_s26, 4  ;;  %s865_s17 = scalar_lea.sflag [#allocation4], %s367_s22  ;;  %s878_s12 = int_to_ptr.vmem [resolvable:$true] %s877_s12 }
  0x22   : > { %536 = vmatpush.bf16.msra.mxu0 %v1139_v4  ;;  %v396_v26 = vadd.f32 %v392_v18, %v386_v20  ;;  %v398_v27 = vadd.f32 %v392_v18, %v388_v21  ;;  %v397_v28 = vadd.f32 %v393_v19, %v387_v22  ;;  %660 = vmatpush.bf16.msra.mxu2 %v1157_v42  ;;  %v1156_v44 = vld [vmem:[%s1611_s6 + $0x30] sm:$0xff]  ;;  %v1150_v45 = vld [vmem:[%s1611_s6] sm:$0xff]  ;;  %v1155_v46 = vld [vmem:[%s1611_s6 + $0x28] sm:$0xff]  ;;  %s1273_s18 = sshra.s32 %s880_s29, 4  ;;  %s1279_s15 = scalar_lea.hbm %s1615_s10, 64  ;;  %s1274_s18 = int_to_ptr.hbm [resolvable:$true] %s1273_s18 }
  0x23   : > { %550 = vmatpush.bf16.msra.mxu1 %v1147_v5  ;;  %v399_v29 = vadd.f32 %v393_v19, %v389_v23  ;;  %701 = vmatpush.bf16.msra.mxu3 %v1152_v41  ;;  %v1154_v47 = vld [vmem:[%s1611_s6 + $0x20] sm:$0xff]  ;;  %v1161_v51 = vld [vmem:[%s1611_s6 + $0x58] sm:$0xff]  ;;  %v1160_v54 = vld [vmem:[%s1611_s6 + $0x50] sm:$0xff]  ;;  %s1275_s21 = scalar_lea.hbm %s1274_s18, 32  ;;  %p1280_p3 = scmp.lt.s32.totalorder %s1274_s18, %s1615_s10 }
  0x24   : > { %v400_v32 = vmax.f32 %v396_v26, 0.0  ;;  %v402_v33 = vmax.f32 %v398_v27, 0.0  ;;  %v401_v34 = vmax.f32 %v397_v28, 0.0  ;;  %v1225_v48 = vld [vmem:[%s1609_s4] ss:$0 sm:$0xff]  ;;  %v1159_v57 = vld [vmem:[%s1611_s6 + $0x48] sm:$0xff]  ;;  %p1276_p0 = scmp.ne.s32.totalorder %s1274_s18, %s1275_s21  ;;  %p1281_p4 = scmp.lt.s32.totalorder %s1279_s15, %s1275_s21 }
  0x25   : > { %v403_v35 = vmax.f32 %v399_v29, 0.0  ;;  %v1226_v53 = vld [vmem:[%s1610_s5] ss:$0 sm:$0xff]  ;;  %v1120_v29 = vld [vmem:[#allocation2 + $0x30] sm:$0xf] }
  0x26   : > { %537 = vmatpush.bf16.msra.mxu0 %v1138_v6  ;;  %v404_v38 = vpack.c.bf16 %v402_v33, %v400_v32  ;;  %661 = vmatpush.bf16.msra.mxu2 %v1156_v44  ;;  %v1158_v62 = vld [vmem:[%s1611_s6 + $0x40] sm:$0xff]  ;;  %v1122_v33 = vld [vmem:[#allocation2 + $0x38] sm:$0xf0]  ;;  %v1104_v41 = vld [vmem:[#allocation2 + $0x10] sm:$0xf]  ;;  %p1277_p1 = pnand %p1276_p0, %p1425_p5  ;;  %p1282_p7 = por %p1281_p4, %p1280_p3 }
  0x27   : > { %551 = vmatpush.bf16.msra.mxu1 %v1146_v7  ;;  %v405_v39 = vpack.c.bf16 %v403_v35, %v401_v34  ;;  %702 = vmatpush.bf16.msra.mxu3 %v1151_v43  ;;  %v1112_v35 = vld [vmem:[#allocation2 + $0x20] sm:$0xf]  ;;  %v1165_v42 = vld [vmem:[#allocation2 + $0x14] sm:$0xf0]  ;;  %v1164_v43 = vld [vmem:[#allocation2 + $0x14] sm:$0xf] }
  0x28   : > { %v1105_v44 = vor.u32 %v1165_v42, %v1104_v41  ;;  %p1278_p2 = pneg %p1277_p1 }
  0x2a   : > { %538 = vmatpush.bf16.msra.mxu0 %v1137_v9  ;;  %662 = vmatpush.bf16.msra.mxu2 %v1155_v46  ;;  %p1283_p8 = pnand %p1282_p7, %p1278_p2 }
  0x2b   : > { %552 = vmatpush.bf16.msra.mxu1 %v1145_v10  ;;  %703 = vmatpush.bf16.msra.mxu3 %v1150_v45  ;;  %v1106_v45 = vld [vmem:[#allocation2 + $0x18] sm:$0xf0] }
  0x2c   : > { %v1109_v46 = vor.u32 %v1164_v43, %v1106_v45 }
  0x2e   : > { %539 = vmatpush.bf16.msra.mxu0 %v1136_v24  ;;  %663 = vmatpush.bf16.msra.mxu2 %v1154_v47  ;;  %v1096_v47 = vld [vmem:[#allocation2] sm:$0xf] }
  0x2f   : > { %553 = vmatpush.bf16.msra.mxu1 %v1144_v25 }
  0x32   : > { %540 = vmatpush.bf16.msra.mxu0 %v1135_v30  ;;  %754 = vmatpush.bf16.msrb.mxu2 %v1161_v51  ;;  %v1169_v30 = vld [vmem:[#allocation2 + $0x34] sm:$0xf0]  ;;  %v1098_v51 = vld [vmem:[#allocation2 + $0x8] sm:$0xf0] }
  0x33   : > { %554 = vmatpush.bf16.msra.mxu1 %v1143_v31  ;;  %v1168_v31 = vld [vmem:[#allocation2 + $0x34] sm:$0xf]  ;;  %v1121_v32 = vor.u32 %v1169_v30, %v1120_v29 }
  0x34   : > { %v1125_v34 = vor.u32 %v1168_v31, %v1122_v33 }
  0x35   : > { %836 = vmatpush.bf16.msrb.mxu3 %v1121_v32 }
  0x36   : > { %541 = vmatpush.bf16.msra.mxu0 %v1134_v36  ;;  %755 = vmatpush.bf16.msrb.mxu2 %v1160_v54  ;;  %v1167_v36 = vld [vmem:[#allocation2 + $0x24] sm:$0xf0] }
  0x37   : > { %555 = vmatpush.bf16.msra.mxu1 %v1142_v37  ;;  %v1166_v37 = vld [vmem:[#allocation2 + $0x24] sm:$0xf] }
  0x39   : > { %542 = vmatmul.bf16.vlgmr.msra.gmra.mxu0 %v404_v38  ;;  %v1113_v38 = vor.u32 %v1167_v36, %v1112_v35 }
  0x3a   : > { %556 = vmatmul.bf16.vlgmr.msra.gmra.mxu1 %v405_v39  ;;  %756 = vmatpush.bf16.msrb.mxu2 %v1159_v57  ;;  %v1114_v39 = vld [vmem:[#allocation2 + $0x28] sm:$0xf0] }
  0x3b   : > { %850 = vmatpush.bf16.msrb.mxu0 %v1125_v34  ;;  %v1117_v40 = vor.u32 %v1166_v37, %v1114_v39  ;;  %837 = vmatpush.bf16.msrb.mxu3 %v1113_v38 }
  0x3e   : > { %757 = vmatpush.bf16.msrb.mxu2 %v1158_v62 }
  0x3f   : > { %851 = vmatpush.bf16.msrb.mxu0 %v1117_v40  ;;  %838 = vmatpush.bf16.msrb.mxu3 %v1105_v44 }
  0x43   : > { %852 = vmatpush.bf16.msrb.mxu0 %v1109_v46 }
  0xb6   : > { %v543_v49 = vpop.f32.mrf.mxu0 }
  0xb7   : > { %v557_v50 = vpop.f32.mrf.mxu1 }
  0xb8   : > { %v558_v52 = vadd.f32 %v557_v50, %v543_v49  ;;  %v1162_v49 = vld [vmem:[#allocation2 + $0x4] sm:$0xf] }
  0xba   : > { %v566_v55 = vmul.f32 %v1225_v48, %v558_v52 }
  0xbc   : > { %v572_v56 = vadd.f32 %v1226_v53, %v566_v55 }
  0xbe   : > { %v574_v58 = vmax.f32 %v572_v56, 0.0  ;;  %v545_v59 = vpop.f32.mrf.mxu0 }
  0xbf   : > { %v559_v60 = vpop.f32.mrf.mxu1 }
  0xc0   : > { %v560_v61 = vadd.f32 %v559_v60, %v545_v59  ;;  %v579_v63 = vrot.slane %v574_v58, 7  ;;  %v1227_v59 = vld [vmem:[%s1612_s7] ss:$0 sm:$0xff] }
  0xc2   : > { %v567_v0 = vmul.f32 %v1225_v48, %v560_v61  ;;  %v585_v2 = vsel %vm578_vm0, 0.0, %v579_v63  ;;  %v1163_v48 = vld [vmem:[#allocation2 + $0x4] sm:$0xf0] }
  0xc3   : > { %v587_v5 = vpack.c.bf16 %v585_v2, %v585_v2  ;;  %v1097_v50 = vor.u32 %v1163_v48, %v1096_v47 }
  0xc4   : > { %v573_v1 = vadd.f32 %v1226_v53, %v567_v0  ;;  %v1101_v53 = vor.u32 %v1162_v49, %v1098_v51 }
  0xc5   : > { %v610_v10 = vunpack.c.l.b16 %v587_v5  ;;  %839 = vmatpush.bf16.msrb.mxu3 %v1097_v50 }
  0xc6   : > { %v575_v3 = vmax.f32 %v573_v1, 0.0  ;;  %853 = vmatpush.bf16.msrb.mxu0 %v1101_v53 }
  0xc8   : > { %v580_v4 = vrot.slane %v575_v3, 7 }
  0xca   : > { %v581_v6 = vsel %vm578_vm0, %v579_v63, %v580_v4  ;;  %v586_v7 = vsel %vm578_vm0, %v580_v4, 0.0  ;;  %v1228_v63 = vld [vmem:[%s1613_s8] ss:$0 sm:$0xff] }
  0xcb   : > { %v589_v8 = vpack.c.bf16 %v586_v7, %v586_v7  ;;  %v588_v9 = vpack.c.bf16 %v581_v6, %v581_v6 }
  0xcd   : > { %v612_v12 = vunpack.c.l.b16 %v589_v8  ;;  %v611_v13 = vunpack.c.l.b16 %v588_v9 }
  0xcf   : > { %v613_v14 = vpack.c.b16 %v611_v13, %v610_v10  ;;  %v614_v18 = vpack.c.b16 %v612_v12, %v612_v12 }
  0xd1   : > { %1068 = vmatmul.msk.bf16.vlgmr.msra.gmra.mxu3 %vm652_vm1, %v613_v14  ;;  %v619_v19 = vshll.u32 %v613_v14, 16  ;;  %v624_v20 = vshll.u32 %v614_v18, 16  ;;  %v617_v21 = vshrl.u32 %v613_v14, 16  ;;  %v720_v26 = vrot.slane %v613_v14, 1 }
  0xd2   : > { %v721_v27 = vrot.slane %v614_v18, 1 }
  0xd3   : > { %v621_v22 = vrot.slane %v619_v19, 1  ;;  %v626_v24 = vrot.slane %v624_v20, 1 }
  0xd4   : > { %v722_v28 = vsel %vm719_vm3, %v720_v26, %v721_v27 }
  0xd5   : > { %v622_v23 = vor.u32 %v621_v22, %v617_v21 }
  0xd7   : > { %v627_v25 = vsel %vm615_vm2, %v622_v23, %v626_v24 }
  0xd8   : > { %1051 = vmatmul.msk.bf16.vlgmr.msra.gmra.mxu2 %vm652_vm1, %v627_v25 }
  0xe8   : > { %1093 = vmatmul.msk.bf16.vlgmr.msrb.gmra.mxu2 %vm652_vm1, %v722_v28 }
 0x154   : > { %v705_v55 = vpop.f32.mrf.mxu3 }
 0x15b   : > { %v665_v52 = vpop.f32.mrf.mxu2 }
 0x15c   : > { %v706_v57 = vadd.f32 %v705_v55, %v665_v52  ;;  %v707_v60 = vpop.f32.mrf.mxu3 }
 0x163   : > { %v667_v54 = vpop.f32.mrf.mxu2 }
 0x164   : > { %v708_v61 = vadd.f32 %v707_v60, %v667_v54 }
 0x16b   : > { %v759_v56 = vpop.f32.mrf.mxu2 }
 0x16c   : > { %v764_v58 = vadd.f32 %v759_v56, %v706_v57 }
 0x16e   : > { %v770_v62 = vmul.f32 %v1227_v59, %v764_v58 }
 0x170   : > { %v776_v2 = vadd.f32 %v1228_v63, %v770_v62 }
 0x172   : > { %v778_v5 = vmax.f32 %v776_v2, 0.0 }
 0x173   : > { %v761_v0 = vpop.f32.mrf.mxu2 }
 0x174   : > { %v765_v1 = vadd.f32 %v761_v0, %v708_v61 }
 0x176   : > { %v771_v3 = vmul.f32 %v1227_v59, %v765_v1 }
 0x178   : > { %v777_v4 = vadd.f32 %v1228_v63, %v771_v3 }
 0x17a   : > { %v779_v6 = vmax.f32 %v777_v4, 0.0 }
 0x17c   : > { %v780_v7 = vpack.c.bf16 %v779_v6, %v778_v5 }
 0x17e   : > { %1126 = vmatmul.msk.bf16.vlgmr.msrb.gmra.mxu3 %vm652_vm1, %v780_v7  ;;  %1127 = vmatmul.msk.bf16.vlgmr.msrb.gmra.mxu0 %vm652_vm1, %v780_v7 }
 0x1fb   : > { %v855_v8 = vpop.f32.mrf.mxu0 }
 0x1fc   : > { %v856_v9 = vadd.f32 %v855_v8, %v1490_v16 }
 0x1fe   : > { %861 = vst [vmem:[%s369_s26 + $0x8] sm:$0xff] %v856_v9 }
 0x201   : > { %v841_v10 = vpop.f32.mrf.mxu3 }
 0x202   : > { %v842_v12 = vadd.f32 %v841_v10, %v1483_v11 }
 0x203   : > { %v857_v13 = vpop.f32.mrf.mxu0 }
 0x204   : > { %860 = vst [vmem:[%s369_s26] sm:$0xff] %v842_v12  ;;  %v858_v14 = vadd.f32 %v857_v13, %v1492_v17 }
 0x206   : > { %863 = vst [vmem:[%s369_s26 + $0x18] sm:$0xff] %v858_v14 }
 0x209   : > { %v843_v16 = vpop.f32.mrf.mxu3 }
 0x20a   : > { %v844_v18 = vadd.f32 %v843_v16, %v1488_v15 }
 0x20c   : > { %862 = vst [vmem:[%s369_s26 + $0x10] sm:$0xff] %v844_v18 }
 0x20d   : > { %1286 = shalt.err (!%p1283_p8)
}
 0x20e   : > { %s1330_s22 = smov 256   ;;  %s1331_s26 = smov 16  }
 0x20f   : > { %1175 = dma.vmem_to_hbm [thread:$0]  (%p1425_p5), %s878_s12, 512, %s880_s29, %s865_s17, %s1330_s22, %s1330_s22, %s1331_s26  }
 0x210 PF: > { %p1187_p9 = scmp.ge.s32.totalorder %s1325_s16, 2  ;;  %s894_s28 = sand.u32 1, %s1313_s13  }
 0x211   : > { %s895_s30 = scalar_lea.sflag [#allocation4], %s894_s28 }
 0x212   : > { %p1182_p10 = pnand %p1187_p9, %p1429_p6 }
 0x214   : > { %p1183_p11 = pneg %p1182_p10 }
 0x216   : > { %1308 = dma.done.wait (%p1183_p11), %s895_s30, 512  }
 0x217   : > { %1310 = vsyncadd (%p1183_p11), %s895_s30, 4294966784  ;;  %s1623_s11 = sld [smem:[#allocation8_spill]]  ;;  %p21_p12 = scmp.ge.s32.totalorder %s1412_s19, 4  }
 0x218   : > { %s1624_s15 = sld [smem:[#allocation9_spill]]  ;;  %s1625_s13 = smov %s1317_s14 }
 0x219   : > { %s1627_s16 = smov %s1412_s19  ;;  %23 = sbr.rel (!%p21_p12) target bundleno = 6 (0x6), region = 102 }
 0x21d   : > { %s1626_s14 = smov %s1623_s11 }
 0x21e   :  { %901 = vsyncpa [#allocation3], 1 }
 0x21f   :  { %903 = vsyncpa [#allocation3 + $0x1], 1 }
 0x220   :  { %904 = vsyncpa [#allocation4], 1 }
 0x221   :  { %906 = vsyncpa [#allocation4 + $0x1], 1 }

</bundles_post_ra>
